<compile_context>
chip_gen: v5e
topology: v5e:2x2
jax: 0.10.0
libtpu: 0.0.40
codegen_flags: <defaults>
</compile_context>

<pallas_src>
import jax
import jax.numpy as jnp
from jax import lax
from jax.experimental import pallas as pl
from jax.experimental.pallas import tpu as pltpu


def _round_up(n, m):
    return ((n + m - 1) // m) * m


def _mlp_kernel(x_ref, w1_ref, b1_ref, w2_ref, b2_ref, w3t_ref, b3t_ref, o_ref):
    # Layer 1: Linear(F -> h1) + ReLU. x streams as f32; cast to bf16 here
    # (VPU cast hides under the DMA/MXU pipeline).
    x = x_ref[...].astype(jnp.bfloat16)
    h = jnp.dot(x, w1_ref[...], preferred_element_type=jnp.float32)
    h = jnp.maximum(h + b1_ref[...], 0.0)

    # Dropout: eval-mode semantics => identity.
    # TODO(synk): training-mode dropout (pltpu.prng_seed/prng_random_bits mask
    # + 1/(1-p) scale) omitted for inference parity.

    # Layer 2: Linear(h1 -> h2) + ReLU.
    h = jnp.dot(h.astype(jnp.bfloat16), w2_ref[...],
                preferred_element_type=jnp.float32)
    h = jnp.maximum(h + b2_ref[...], 0.0)

    # Output layer, lane-packed: z_t[o, b] = sum_k w3t[o, k] * h[b, k].
    # Same contract-last-dims dot_general shape as q @ k.T in flash attention,
    # so the result lands directly as [out_size, TILE_B] (batch on lanes) and
    # the store is lane-dense with no padded columns.
    z_t = lax.dot_general(w3t_ref[...], h.astype(jnp.bfloat16),
                          dimension_numbers=(((1,), (1,)), ((), ())),
                          preferred_element_type=jnp.float32)
    z_t = z_t + b3t_ref[...]
    # sigmoid(z) = 1 / (1 + exp(-z)); exp + approx reciprocal both run on EUP.
    o_ref[...] = pl.reciprocal(1.0 + jnp.exp(-z_t), approx=True)


def scenario_predictor_forward(x, params, *, tile_b=1024, num_cores=2):
    """Fused MLP forward. x: [B, F] float32. params: dict of [in, out] weights."""
    w1, b1, w2, b2, w3, b3 = (params["w1"], params["b1"], params["w2"],
                              params["b2"], params["w3"], params["b3"])
    B, F = x.shape
    h1 = w1.shape[1]
    h2 = w2.shape[1]
    out_size = w3.shape[1]

    # Weights are tiny: cast to bf16 once here. x stays f32 (cast in-kernel).
    # w3/b3 are transposed so the last layer emits the lane-packed tile directly.
    w1b = w1.astype(jnp.bfloat16)                    # [F,  h1]
    w2b = w2.astype(jnp.bfloat16)                    # [h1, h2]
    w3tb = jnp.transpose(w3).astype(jnp.bfloat16)    # [out_size, h2]
    b1f = b1.astype(jnp.float32)                     # [1, h1]
    b2f = b2.astype(jnp.float32)                     # [1, h2]
    b3t = jnp.transpose(b3).astype(jnp.float32)      # [out_size, 1]

    # Batch tile: multiple of 128 (lane-dense output store). Shrink so the
    # "parallel" batch axis has >= num_cores grid steps when B allows (feeds
    # both v7x TensorCores). VMEM footprint stays far under the 32 MiB default
    # scoped limit for TILE_B <= 8192, so no vmem_limit_bytes override needed.
    TILE_B = _round_up(max(128, min(int(tile_b), 8192)), 128)
    if B > num_cores * 128:
        TILE_B = min(TILE_B, _round_up(pl.cdiv(B, num_cores), 128))
    grid = (pl.cdiv(B, TILE_B),)

    const = lambda shape: pl.BlockSpec(shape, lambda i: (0, 0))

    flops = 2 * B * (F * h1 + h1 * h2 + h2 * out_size)
    bytes_accessed = (x.size * 4 + B * out_size * 4
                      + (w1b.size + w2b.size + w3tb.size) * 2
                      + (b1f.size + b2f.size + b3t.size) * 4)
    cost = pl.CostEstimate(flops=flops,
                           transcendentals=B * out_size,
                           bytes_accessed=bytes_accessed)

    out_t = pl.pallas_call(
        _mlp_kernel,
        out_shape=jax.ShapeDtypeStruct((out_size, B), jnp.float32),
        grid=grid,
        in_specs=[
            pl.BlockSpec((TILE_B, F), lambda i: (i, 0)),   # streamed x rows (f32)
            const(w1b.shape), const(b1f.shape),            # VMEM-resident weights
            const(w2b.shape), const(b2f.shape),
            const(w3tb.shape), const(b3t.shape),
        ],
        out_specs=pl.BlockSpec((out_size, TILE_B), lambda i: (0, i)),
        compiler_params=pltpu.CompilerParams(
            dimension_semantics=("parallel",)),
        cost_estimate=cost,
    )(x, w1b, b1f, w2b, b2f, w3tb, b3t)

    # [out_size, B] -> [B, out_size] (trivial reshape when out_size == 1).
    return jnp.transpose(out_t)


def init_params(key, input_size, hidden_layers=(128, 64), output_size=1):
    """Deterministic init. Weights stored transposed vs. torch: [in, out]."""
    dims = [input_size] + list(hidden_layers) + [output_size]
    params = {}
    for i, name in enumerate(["1", "2", "3"]):
        fan_in, fan_out = dims[i], dims[i + 1]
        key, kw, kb = jax.random.split(key, 3)
        bound = 1.0 / jnp.sqrt(fan_in)
        params[f"w{name}"] = jax.random.uniform(
            kw, (fan_in, fan_out), jnp.float32, -bound, bound)
        params[f"b{name}"] = jax.random.uniform(
            kb, (1, fan_out), jnp.float32, -bound, bound)
    return params


def reference_forward(x, p):
    h = jnp.maximum(x @ p["w1"] + p["b1"], 0.0)
    h = jnp.maximum(h @ p["w2"] + p["b2"], 0.0)
    return jax.nn.sigmoid(h @ p["w3"] + p["b3"])


if __name__ == "__main__":
    key = jax.random.PRNGKey(0)
    key, kx, kp = jax.random.split(key, 3)

    batch = 300          # not a multiple of TILE_B -> exercises the ragged last block
    input_size = 32
    x = jax.random.normal(kx, (batch, input_size), jnp.float32)
    params = init_params(kp, input_size, hidden_layers=(128, 64), output_size=1)

    # tile_b=128 -> grid of 3 steps (pipelining + partial-block path exercised)
    out = scenario_predictor_forward(x, params, tile_b=128)
    out = jax.block_until_ready(out)

    ref = reference_forward(x, params)
    assert out.shape == (batch, 1), out.shape
    # bf16 MXU operands + approx reciprocal -> loosened tolerance
    assert jnp.allclose(out, ref, atol=2e-2, rtol=2e-2), "mismatch vs reference"

    print("KERNEL_OK")
</pallas_src>

<mosaic_0001>
module attributes {stable_mosaic.version = 11 : i64} {
  func.func @_mlp_kernel(%arg0: i32, %arg1: memref<128x32xf32, #tpu.memory_space<vmem>>, %arg2: memref<32x128xbf16, #tpu.memory_space<vmem>>, %arg3: memref<1x128xf32, #tpu.memory_space<vmem>>, %arg4: memref<128x64xbf16, #tpu.memory_space<vmem>>, %arg5: memref<1x64xf32, #tpu.memory_space<vmem>>, %arg6: memref<1x64xbf16, #tpu.memory_space<vmem>>, %arg7: memref<1x1xf32, #tpu.memory_space<vmem>>, %arg8: memref<1x128xf32, #tpu.memory_space<vmem>>) attributes {dimension_semantics = [#tpu.dimension_semantics<parallel>], iteration_bounds = array<i64: 3>, scalar_prefetch = 0 : i64, scratch_operands = 0 : i64, tpu.core_type = #tpu.core_type<tc>, window_params = [{transform_indices = @transform_0, window_bounds = array<i64: 128, 32>}, {pipeline_mode = #tpu.pipeline_mode<synchronous>, transform_indices = @transform_1, window_bounds = array<i64: 32, 128>}, {pipeline_mode = #tpu.pipeline_mode<synchronous>, transform_indices = @transform_2, window_bounds = array<i64: 1, 128>}, {pipeline_mode = #tpu.pipeline_mode<synchronous>, transform_indices = @transform_3, window_bounds = array<i64: 128, 64>}, {pipeline_mode = #tpu.pipeline_mode<synchronous>, transform_indices = @transform_4, window_bounds = array<i64: 1, 64>}, {pipeline_mode = #tpu.pipeline_mode<synchronous>, transform_indices = @transform_5, window_bounds = array<i64: 1, 64>}, {pipeline_mode = #tpu.pipeline_mode<synchronous>, transform_indices = @transform_6, window_bounds = array<i64: 1, 1>}, {transform_indices = @transform_7, window_bounds = array<i64: 1, 128>}]} {
    %c0 = arith.constant 0 : index
    %c0_0 = arith.constant 0 : index
    %0 = vector.load %arg1[%c0, %c0_0] : memref<128x32xf32, #tpu.memory_space<vmem>>, vector<128x32xf32>
    %1 = arith.truncf %0 : vector<128x32xf32> to vector<128x32xbf16>
    %c0_1 = arith.constant 0 : index
    %c0_2 = arith.constant 0 : index
    %2 = vector.load %arg2[%c0_1, %c0_2] : memref<32x128xbf16, #tpu.memory_space<vmem>>, vector<32x128xbf16>
    %cst = arith.constant dense<0.000000e+00> : vector<128x128xf32>
    %3 = tpu.matmul %1, %2, %cst {dimension_numbers = #tpu.dot_dimension_numbers<[1], [0], [0], [1], [0, 0, 1, 1], [], []>} : vector<128x32xbf16>, vector<32x128xbf16>, vector<128x128xf32> -> vector<128x128xf32>
    %c0_3 = arith.constant 0 : index
    %c0_4 = arith.constant 0 : index
    %4 = vector.load %arg3[%c0_3, %c0_4] : memref<1x128xf32, #tpu.memory_space<vmem>>, vector<1x128xf32>
    %5 = vector.broadcast %4 : vector<1x128xf32> to vector<128x128xf32>
    %6 = arith.addf %3, %5 : vector<128x128xf32>
    %cst_5 = arith.constant 0.000000e+00 : f32
    %7 = vector.broadcast %cst_5 : f32 to vector<128x128xf32>
    %8 = arith.maximumf %6, %7 : vector<128x128xf32>
    %9 = arith.truncf %8 : vector<128x128xf32> to vector<128x128xbf16>
    %c0_6 = arith.constant 0 : index
    %c0_7 = arith.constant 0 : index
    %10 = vector.load %arg4[%c0_6, %c0_7] : memref<128x64xbf16, #tpu.memory_space<vmem>>, vector<128x64xbf16>
    %cst_8 = arith.constant dense<0.000000e+00> : vector<128x64xf32>
    %11 = tpu.matmul %9, %10, %cst_8 {dimension_numbers = #tpu.dot_dimension_numbers<[1], [0], [0], [1], [0, 0, 1, 1], [], []>} : vector<128x128xbf16>, vector<128x64xbf16>, vector<128x64xf32> -> vector<128x64xf32>
    %c0_9 = arith.constant 0 : index
    %c0_10 = arith.constant 0 : index
    %12 = vector.load %arg5[%c0_9, %c0_10] : memref<1x64xf32, #tpu.memory_space<vmem>>, vector<1x64xf32>
    %13 = vector.broadcast %12 : vector<1x64xf32> to vector<128x64xf32>
    %14 = arith.addf %11, %13 : vector<128x64xf32>
    %cst_11 = arith.constant 0.000000e+00 : f32
    %15 = vector.broadcast %cst_11 : f32 to vector<128x64xf32>
    %16 = arith.maximumf %14, %15 : vector<128x64xf32>
    %c0_12 = arith.constant 0 : index
    %c0_13 = arith.constant 0 : index
    %17 = vector.load %arg6[%c0_12, %c0_13] : memref<1x64xbf16, #tpu.memory_space<vmem>>, vector<1x64xbf16>
    %18 = arith.truncf %16 : vector<128x64xf32> to vector<128x64xbf16>
    %cst_14 = arith.constant dense<0.000000e+00> : vector<1x128xf32>
    %19 = tpu.matmul %17, %18, %cst_14 {dimension_numbers = #tpu.dot_dimension_numbers<[1], [1], [0], [0], [0, 0, 1, 0], [], []>} : vector<1x64xbf16>, vector<128x64xbf16>, vector<1x128xf32> -> vector<1x128xf32>
    %c0_15 = arith.constant 0 : index
    %c0_16 = arith.constant 0 : index
    %20 = vector.load %arg7[%c0_15, %c0_16] : memref<1x1xf32, #tpu.memory_space<vmem>>, vector<1x1xf32>
    %21 = vector.broadcast %20 : vector<1x1xf32> to vector<1x128xf32>
    %22 = arith.addf %19, %21 : vector<1x128xf32>
    %cst_17 = arith.constant 0.000000e+00 : f32
    %23 = vector.broadcast %cst_17 : f32 to vector<1x128xf32>
    %24 = arith.subf %23, %22 : vector<1x128xf32>
    %25 = math.exp %24 : vector<1x128xf32>
    %cst_18 = arith.constant 1.000000e+00 : f32
    %26 = vector.broadcast %cst_18 : f32 to vector<1x128xf32>
    %27 = arith.addf %26, %25 : vector<1x128xf32>
    %28 = tpu.reciprocal %27 {approx = true} : vector<1x128xf32> -> vector<1x128xf32>
    %c0_19 = arith.constant 0 : index
    %c0_20 = arith.constant 0 : index
    %29 = vector.load %arg8[%c0_19, %c0_20] : memref<1x128xf32, #tpu.memory_space<vmem>>, vector<1x128xf32>
    tpu.vector_store %arg8[%c0_19, %c0_20], %28 {strides = array<i32>} : memref<1x128xf32, #tpu.memory_space<vmem>>, vector<1x128xf32>,
    return
  }
  func.func @transform_0(%arg0: i32) -> (i32, i32) {
    %c0_i32 = arith.constant 0 : i32
    %c0_i32_0 = arith.constant 0 : i32
    return %arg0, %c0_i32 : i32, i32
  }
  func.func @transform_1(%arg0: i32) -> (i32, i32) {
    %c0_i32 = arith.constant 0 : i32
    %c0_i32_0 = arith.constant 0 : i32
    %c0_i32_1 = arith.constant 0 : i32
    return %c0_i32, %c0_i32_0 : i32, i32
  }
  func.func @transform_2(%arg0: i32) -> (i32, i32) {
    %c0_i32 = arith.constant 0 : i32
    %c0_i32_0 = arith.constant 0 : i32
    %c0_i32_1 = arith.constant 0 : i32
    return %c0_i32, %c0_i32_0 : i32, i32
  }
  func.func @transform_3(%arg0: i32) -> (i32, i32) {
    %c0_i32 = arith.constant 0 : i32
    %c0_i32_0 = arith.constant 0 : i32
    %c0_i32_1 = arith.constant 0 : i32
    return %c0_i32, %c0_i32_0 : i32, i32
  }
  func.func @transform_4(%arg0: i32) -> (i32, i32) {
    %c0_i32 = arith.constant 0 : i32
    %c0_i32_0 = arith.constant 0 : i32
    %c0_i32_1 = arith.constant 0 : i32
    return %c0_i32, %c0_i32_0 : i32, i32
  }
  func.func @transform_5(%arg0: i32) -> (i32, i32) {
    %c0_i32 = arith.constant 0 : i32
    %c0_i32_0 = arith.constant 0 : i32
    %c0_i32_1 = arith.constant 0 : i32
    return %c0_i32, %c0_i32_0 : i32, i32
  }
  func.func @transform_6(%arg0: i32) -> (i32, i32) {
    %c0_i32 = arith.constant 0 : i32
    %c0_i32_0 = arith.constant 0 : i32
    %c0_i32_1 = arith.constant 0 : i32
    return %c0_i32, %c0_i32_0 : i32, i32
  }
  func.func @transform_7(%arg0: i32) -> (i32, i32) {
    %c0_i32 = arith.constant 0 : i32
    %c0_i32_0 = arith.constant 0 : i32
    return %c0_i32, %arg0 : i32, i32
  }
}

</mosaic_0001>

<bundles_post_ra>
// kernel: tpu_custom_call.1
= control target key start
LH: loop header
LB: loop body
LE: loop exit
PB: predicated region body
PF: predicated region fallthrough
CT: control target
= control target key end

     0   :  { %s1098_s0 = inlined_call_operand.vmem [shape: f32[300,32], index: 0, kind: input, shape index: {}]   ;;  %s1099_s1 = inlined_call_operand.vmem [shape: bf16[32,128], index: 1, kind: input, shape index: {}]   ;;  %s1100_s2 = inlined_call_operand.vmem [shape: f32[1,128], index: 2, kind: input, shape index: {}]   ;;  %s1101_s3 = inlined_call_operand.vmem [shape: bf16[128,64], index: 3, kind: input, shape index: {}]   ;;  %s1102_s4 = inlined_call_operand.vmem [shape: f32[1,64], index: 4, kind: input, shape index: {}]   ;;  %s1103_s5 = inlined_call_operand.vmem [shape: bf16[1,64], index: 5, kind: input, shape index: {}]   ;;  %s1104_s6 = inlined_call_operand.<no memory space> [shape: f32[1,1], index: 6, kind: input, shape index: {}]   ;;  %s1105_s7 = inlined_call_operand.hbm [shape: f32[1,300], index: 7, kind: output, shape index: {}]  }
   0x1   :  { %v12_v0 = vstv %s1104_s6 }
   0x2   :  { %13 = vst [vmem:[#allocation2] sm:$0x1] %v12_v0 }
   0x3   :  { %14 = vsyncpa [#allocation4], 0 }
   0x4   :  { %16 = vsyncpa [#allocation4 + $0x1], 0  ;;  %s937_s26 = smov 0   ;;  %s939_s27 = smov 0  }
   0x5   :  { %s941_s28 = smov 0   ;;  %s943_s29 = smov 0  }
   0x6 LB: > { %s958_s6 = sadd.s32 4294967295, %s891_s29   ;;  %s707_s30 = sadd.s32 4294967294, %s891_s29   ;;  %s891_s29 = sphi %s943_s29, %s1111_s29   ;;  %s887_s28 = sphi %s941_s28, %s1110_s28   ;;  %s883_s27 = sphi %s939_s27, %s1109_s27   ;;  %s879_s26 = sphi %s937_s26, %s1108_s26  }
   0x7   : > { %s962_s8 = sadd.s32 1, %s891_s29   ;;  %s181_s9 = sadd.s32 1, %s887_s28 }
   0x8   : > { %s178_s10 = ssub.s32 %s891_s29, %s962_s8  ;;  %p191_p0 = scmp.ne.s32.totalorder %s887_s28, %s883_s27 }
   0x9   : > { %p179_p1 = scmp.eq.s32.totalorder %s178_s10, 0  ;;  %p192_p2 = scmp.eq.s32.totalorder %s958_s6, 2 }
   0xa   : > { %p197_p3 = scmp.ne.s32.totalorder %s883_s27, %s879_s26  ;;  %p198_p4 = scmp.eq.s32.totalorder %s707_s30, 2 }
   0xb   : > { %s973_s11 = scalar_select %p179_p1, %s887_s28, %s181_s9  }
   0xc   : > { %p975_p5 = por %p192_p2, %p191_p0  ;;  %p979_p6 = por %p198_p4, %p197_p3 }
   0xd   : > { %p710_p7 = scmp.ge.s32.totalorder %s891_s29, 1  ;;  %p251_p8 = scmp.lt.s32.totalorder %s891_s29, 4 }
   0xf   : > { %p252_p9 = pnand %p710_p7, %p251_p8 }
  0x10   : > { %s711_s16 = sshll.u32 (!%p252_p9), %s958_s6, 4  ;;  %s284_s15 = sand.u32 (!%p252_p9), 1, %s883_s27  }
  0x11   : > { %255 = sbr.rel (%p252_p9) target bundleno = 649 (0x289), region = 48  ;;  %p291_p10 = scmp.lt.s32.totalorder (!%p252_p9), %s711_s16, 37 }
  0x12   : > { %s648_s18 = scalar_lea.hbm (!%p252_p9), %s1105_s7, %s958_s6  ;;  %s640_s23 = scalar_lea.sflag (!%p252_p9), [#allocation4], %s284_s15 }
  0x13   : > { %s652_s21 = sshll.u32 (!%p252_p9), %s648_s18, 4  ;;  %s849_s6 = scalar_lea.hbm (!%p252_p9), %s1105_s7, 3  ;;  %s653_s21 = int_to_ptr.hbm [resolvable:$true] %s652_s21 }
  0x14   : > { %s843_s24 = sshra.s32 (!%p252_p9), %s653_s21, 4  ;;  %s844_s24 = int_to_ptr.hbm [resolvable:$true] %s843_s24 }
  0x15   : > { %s845_s25 = scalar_lea.hbm (!%p252_p9), %s844_s24, 1  ;;  %p850_p0 = scmp.lt.s32.totalorder (!%p252_p9), %s844_s24, %s1105_s7 }
  0x16   : > { %v765_v1 = vld [vmem:[%s1099_s1 + $0x8] sm:$0xff]  ;;  %v764_v2 = vld [vmem:[%s1099_s1] sm:$0xff]  ;;  %s1113_s16 = smov (!%p291_p10, %s711_s16), 37  ;;  %vm345_vm0 = vcmask 261120   ;;  %v773_v18 = vld [vmem:[%s1101_s3 + $0x38] sm:$0xff]  ;;  %vm592_vm1 = vcmask 523264   ;;  %p846_p11 = scmp.ne.s32.totalorder %s844_s24, %s845_s25 }
  0x17   : > { %376 = vmatpush.bf16.msra.mxu0 %v765_v1  ;;  %s712_s19 = sshll.u32 %s1113_s16, 3  ;;  %511 = vmatpush.bf16.msra.mxu1 %v773_v18  ;;  %v772_v22 = vld [vmem:[%s1101_s3 + $0x30] sm:$0xff]  ;;  %v771_v23 = vld [vmem:[%s1101_s3 + $0x28] sm:$0xff]  ;;  %v770_v24 = vld [vmem:[%s1101_s3 + $0x20] sm:$0xff]  ;;  %p851_p1 = scmp.lt.s32.totalorder %s849_s6, %s845_s25 }
  0x18   : > { %s995_s22 = scalar_lea.vmem %s1098_s0, %s712_s19  ;;  %774 = vmatpush.bf16.msra.mxu3 %v773_v18  ;;  %v769_v27 = vld [vmem:[%s1101_s3 + $0x18] sm:$0xff]  ;;  %v768_v29 = vld [vmem:[%s1101_s3 + $0x10] sm:$0xff]  ;;  %v767_v30 = vld [vmem:[%s1101_s3 + $0x8] sm:$0xff]  ;;  %s285_s19 = scalar_lea.vmem [#allocation3], %s284_s15 }
  0x19   : > { %v301_v3 = vld [vmem:[%s995_s22] sm:$0xff]  ;;  %v302_v4 = vld [vmem:[%s995_s22 + $0x8] sm:$0xff]  ;;  %v303_v6 = vld [vmem:[%s995_s22 + $0x10] sm:$0xff]  ;;  %s650_s20 = sshll.u32 %s285_s19, 4  ;;  %p847_p12 = pnand %p846_p11, %p975_p5  ;;  %s651_s20 = int_to_ptr.vmem [resolvable:$true] %s650_s20 }
  0x1a   : > { %v317_v5 = vpack.c.bf16 %v302_v4, %v301_v3  ;;  %v304_v7 = vld [vmem:[%s995_s22 + $0x18] sm:$0xff]  ;;  %v305_v9 = vld [vmem:[%s995_s22 + $0x20] sm:$0xff]  ;;  %v306_v10 = vld [vmem:[%s995_s22 + $0x28] sm:$0xff]  ;;  %p852_p2 = por %p851_p1, %p850_p0 }
  0x1b   : > { %377 = vmatpush.bf16.msra.mxu0 %v764_v2  ;;  %v318_v8 = vpack.c.bf16 %v304_v7, %v303_v6  ;;  %v319_v11 = vpack.c.bf16 %v306_v10, %v305_v9  ;;  %v307_v12 = vld [vmem:[%s995_s22 + $0x30] sm:$0xff]  ;;  %v308_v13 = vld [vmem:[%s995_s22 + $0x38] sm:$0xff]  ;;  %v309_v15 = vld [vmem:[%s995_s22 + $0x40] sm:$0xff]  ;;  %512 = vmatpush.bf16.msra.mxu1 %v772_v22  ;;  %p848_p13 = pneg %p847_p12 }
  0x1c   : > { %v320_v14 = vpack.c.bf16 %v308_v13, %v307_v12  ;;  %v310_v16 = vld [vmem:[%s995_s22 + $0x48] sm:$0xff]  ;;  %v311_v19 = vld [vmem:[%s995_s22 + $0x50] sm:$0xff]  ;;  %v312_v20 = vld [vmem:[%s995_s22 + $0x58] sm:$0xff]  ;;  %775 = vmatpush.bf16.msra.mxu3 %v772_v22 }
  0x1d   : > { %v321_v17 = vpack.c.bf16 %v310_v16, %v309_v15  ;;  %v322_v21 = vpack.c.bf16 %v312_v20, %v311_v19  ;;  %v313_v25 = vld [vmem:[%s995_s22 + $0x60] sm:$0xff]  ;;  %v314_v26 = vld [vmem:[%s995_s22 + $0x68] sm:$0xff]  ;;  %v315_v32 = vld [vmem:[%s995_s22 + $0x70] sm:$0xff]  ;;  %p853_p3 = pnand %p852_p2, %p848_p13 }
  0x1e   : > { %721 = vmatmul.msk.bf16.vlgmr.msra.gmra.mxu0 %vm345_vm0, %v317_v5  ;;  %v323_v28 = vpack.c.bf16 %v314_v26, %v313_v25  ;;  %v766_v31 = vld [vmem:[%s1101_s3] sm:$0xff]  ;;  %v316_v33 = vld [vmem:[%s995_s22 + $0x78] sm:$0xff] }
  0x1f   : > { %513 = vmatpush.bf16.msra.mxu1 %v771_v23  ;;  %v324_v34 = vpack.c.bf16 %v316_v33, %v315_v32  ;;  %v823_v36 = vld [vmem:[%s1100_s2] ss:$0 sm:$0xff] }
  0x20   : > { %776 = vmatpush.bf16.msra.mxu3 %v771_v23 }
  0x23   : > { %514 = vmatpush.bf16.msra.mxu1 %v770_v24 }
  0x24   : > { %777 = vmatpush.bf16.msra.mxu3 %v770_v24 }
  0x27   : > { %515 = vmatpush.bf16.msra.mxu1 %v769_v27 }
  0x28   : > { %778 = vmatpush.bf16.msra.mxu3 %v769_v27 }
  0x2b   : > { %516 = vmatpush.bf16.msra.mxu1 %v768_v29 }
  0x2c   : > { %779 = vmatpush.bf16.msra.mxu3 %v768_v29  ;;  %v824_v29 = vld [vmem:[%s1102_s4] ss:$0 sm:$0xff] }
  0x2e   : > { %722 = vmatmul.msk.bf16.gmra.mxu0 %vm345_vm0, %v318_v8 }
  0x2f   : > { %517 = vmatpush.bf16.msra.mxu1 %v767_v30 }
  0x30   : > { %780 = vmatpush.bf16.msra.mxu3 %v767_v30 }
  0x33   : > { %518 = vmatpush.bf16.msra.mxu1 %v766_v31 }
  0x34   : > { %781 = vmatpush.bf16.msra.mxu3 %v766_v31 }
  0x3e   : > { %723 = vmatmul.msk.bf16.gmra.mxu0 %vm345_vm0, %v319_v11 }
  0x4e   : > { %724 = vmatmul.msk.bf16.gmra.mxu0 %vm345_vm0, %v320_v14 }
  0x5e   : > { %725 = vmatmul.msk.bf16.gmra.mxu0 %vm345_vm0, %v321_v17 }
  0x6e   : > { %726 = vmatmul.msk.bf16.gmra.mxu0 %vm345_vm0, %v322_v21 }
  0x7e   : > { %727 = vmatmul.msk.bf16.gmra.mxu0 %vm345_vm0, %v323_v28 }
  0x8e   : > { %728 = vmatmul.msk.bf16.gmra.mxu0 %vm345_vm0, %v324_v34 }
  0x9b   : > { %v379_v35 = vpop.f32.mrf.mxu0 }
  0x9c   : > { %v380_v37 = vadd.f32 %v823_v36, %v379_v35 }
  0x9e   : > { %v419_v40 = vmax.f32 %v380_v37, 0.0 }
  0xa3   : > { %v381_v38 = vpop.f32.mrf.mxu0 }
  0xa4   : > { %v382_v39 = vadd.f32 %v823_v36, %v381_v38 }
  0xa6   : > { %v420_v41 = vmax.f32 %v382_v39, 0.0 }
  0xa8   : > { %v435_v42 = vpack.c.bf16 %v420_v41, %v419_v40 }
  0xaa   : > { %519 = vmatmul.bf16.vlgmr.msra.gmra.mxu1 %v435_v42 }
  0xab   : > { %v384_v43 = vpop.f32.mrf.mxu0 }
  0xac   : > { %v385_v44 = vadd.f32 %v823_v36, %v384_v43 }
  0xae   : > { %v421_v47 = vmax.f32 %v385_v44, 0.0 }
  0xb3   : > { %v386_v45 = vpop.f32.mrf.mxu0 }
  0xb4   : > { %v387_v46 = vadd.f32 %v823_v36, %v386_v45 }
  0xb6   : > { %v422_v48 = vmax.f32 %v387_v46, 0.0 }
  0xb8   : > { %v436_v49 = vpack.c.bf16 %v422_v48, %v421_v47 }
  0xba   : > { %524 = vmatmul.bf16.gmra.mxu1 %v436_v49 }
  0xbb   : > { %v389_v50 = vpop.f32.mrf.mxu0 }
  0xbc   : > { %v390_v51 = vadd.f32 %v823_v36, %v389_v50 }
  0xbe   : > { %v423_v54 = vmax.f32 %v390_v51, 0.0 }
  0xc3   : > { %v391_v52 = vpop.f32.mrf.mxu0 }
  0xc4   : > { %v392_v53 = vadd.f32 %v823_v36, %v391_v52 }
  0xc6   : > { %v424_v55 = vmax.f32 %v392_v53, 0.0 }
  0xc8   : > { %v437_v56 = vpack.c.bf16 %v424_v55, %v423_v54 }
  0xca   : > { %529 = vmatmul.bf16.gmra.mxu1 %v437_v56 }
  0xcb   : > { %v394_v57 = vpop.f32.mrf.mxu0 }
  0xcc   : > { %v395_v58 = vadd.f32 %v823_v36, %v394_v57 }
  0xce   : > { %v425_v61 = vmax.f32 %v395_v58, 0.0 }
  0xd3   : > { %v396_v59 = vpop.f32.mrf.mxu0 }
  0xd4   : > { %v397_v60 = vadd.f32 %v823_v36, %v396_v59 }
  0xd6   : > { %v426_v62 = vmax.f32 %v397_v60, 0.0 }
  0xd8   : > { %v438_v63 = vpack.c.bf16 %v426_v62, %v425_v61 }
  0xda   : > { %534 = vmatmul.bf16.gmra.mxu1 %v438_v63 }
  0xdb   : > { %v399_v0 = vpop.f32.mrf.mxu0 }
  0xdc   : > { %v400_v1 = vadd.f32 %v823_v36, %v399_v0 }
  0xde   : > { %v427_v4 = vmax.f32 %v400_v1, 0.0 }
  0xe3   : > { %v401_v2 = vpop.f32.mrf.mxu0 }
  0xe4   : > { %v402_v3 = vadd.f32 %v823_v36, %v401_v2 }
  0xe6   : > { %v428_v5 = vmax.f32 %v402_v3, 0.0 }
  0xe8   : > { %v439_v6 = vpack.c.bf16 %v428_v5, %v427_v4 }
  0xea   : > { %539 = vmatmul.bf16.gmra.mxu1 %v439_v6 }
  0xeb   : > { %v404_v7 = vpop.f32.mrf.mxu0 }
  0xec   : > { %v405_v8 = vadd.f32 %v823_v36, %v404_v7 }
  0xee   : > { %v429_v11 = vmax.f32 %v405_v8, 0.0 }
  0xf3   : > { %v406_v9 = vpop.f32.mrf.mxu0 }
  0xf4   : > { %v407_v10 = vadd.f32 %v823_v36, %v406_v9 }
  0xf6   : > { %v430_v12 = vmax.f32 %v407_v10, 0.0 }
  0xf8   : > { %v440_v13 = vpack.c.bf16 %v430_v12, %v429_v11 }
  0xfa   : > { %544 = vmatmul.bf16.vlgmr.msra.gmra.mxu3 %v440_v13 }
  0xfb   : > { %v409_v14 = vpop.f32.mrf.mxu0 }
  0xfc   : > { %v410_v15 = vadd.f32 %v823_v36, %v409_v14 }
  0xfe   : > { %v431_v18 = vmax.f32 %v410_v15, 0.0 }
 0x103   : > { %v411_v16 = vpop.f32.mrf.mxu0 }
 0x104   : > { %v412_v17 = vadd.f32 %v823_v36, %v411_v16 }
 0x106   : > { %v432_v19 = vmax.f32 %v412_v17, 0.0 }
 0x108   : > { %v441_v20 = vpack.c.bf16 %v432_v19, %v431_v18 }
 0x10a   : > { %549 = vmatmul.bf16.gmra.mxu3 %v441_v20 }
 0x10b   : > { %v414_v21 = vpop.f32.mrf.mxu0 }
 0x10c   : > { %v415_v22 = vadd.f32 %v823_v36, %v414_v21 }
 0x10e   : > { %v433_v25 = vmax.f32 %v415_v22, 0.0 }
 0x113   : > { %v416_v23 = vpop.f32.mrf.mxu0 }
 0x114   : > { %v417_v24 = vadd.f32 %v823_v36, %v416_v23 }
 0x116   : > { %v434_v26 = vmax.f32 %v417_v24, 0.0  ;;  %v585_v24 = vld [vmem:[#allocation2] sm:$0x1] }
 0x118   : > { %v442_v27 = vpack.c.bf16 %v434_v26, %v433_v25  ;;  %v893_v25 = vmov 0  }
 0x119   : > { %822 = vset.pattern.permute.xlu0 %v893_v25 }
 0x11a   : > { %554 = vmatmul.bf16.gmra.mxu3 %v442_v27  ;;  %588 = vperm.xlu0 %822, %v585_v24  }
 0x127   : > { %v520_v28 = vpop.f32.mrf.mxu1 }
 0x128   : > { %v521_v30 = vadd.f32 %v824_v29, %v520_v28 }
 0x12a   : > { %v560_v33 = vmax.f32 %v521_v30, 0.0 }
 0x12f   : > { %v522_v31 = vpop.f32.mrf.mxu1 }
 0x130   : > { %v523_v32 = vadd.f32 %v824_v29, %v522_v31  ;;  %v576_v31 = vld [vmem:[%s1103_s5] sm:$0x1] }
 0x132   : > { %v561_v34 = vmax.f32 %v523_v32, 0.0 }
 0x134   : > { %v1051_v35 = vpack.c.bf16 %v561_v34, %v560_v33 }
 0x137   : > { %v525_v37 = vpop.f32.mrf.mxu1 }
 0x138   : > { %v526_v38 = vadd.f32 %v824_v29, %v525_v37 }
 0x13a   : > { %v562_v40 = vmax.f32 %v526_v38, 0.0 }
 0x13f   : > { %v527_v39 = vpop.f32.mrf.mxu1 }
 0x140   : > { %v528_v36 = vadd.f32 %v824_v29, %v527_v39 }
 0x142   : > { %v563_v41 = vmax.f32 %v528_v36, 0.0 }
 0x144   : > { %v578_v42 = vpack.c.bf16 %v563_v41, %v562_v40 }
 0x146   : > { %v600_v30 = vsel %vm592_vm1, %v578_v42, 0 }
 0x147   : > { %v530_v44 = vpop.f32.mrf.mxu1 }
 0x148   : > { %v531_v21 = vadd.f32 %v824_v29, %v530_v44 }
 0x14a   : > { %v564_v26 = vmax.f32 %v531_v21, 0.0 }
 0x14f   : > { %v532_v46 = vpop.f32.mrf.mxu1 }
 0x150   : > { %v533_v19 = vadd.f32 %v824_v29, %v532_v46 }
 0x152   : > { %v565_v22 = vmax.f32 %v533_v19, 0.0 }
 0x154   : > { %v579_v27 = vpack.c.bf16 %v565_v22, %v564_v26 }
 0x156   : > { %v603_v28 = vsel %vm592_vm1, %v579_v27, 0 }
 0x157   : > { %v535_v49 = vpop.f32.mrf.mxu1 }
 0x158   : > { %v536_v15 = vadd.f32 %v824_v29, %v535_v49 }
 0x15a   : > { %v566_v18 = vmax.f32 %v536_v15, 0.0 }
 0x15f   : > { %v537_v51 = vpop.f32.mrf.mxu1 }
 0x160   : > { %v538_v13 = vadd.f32 %v824_v29, %v537_v51 }
 0x162   : > { %v567_v16 = vmax.f32 %v538_v13, 0.0 }
 0x164   : > { %v580_v20 = vpack.c.bf16 %v567_v16, %v566_v18 }
 0x166   : > { %v606_v23 = vsel %vm592_vm1, %v580_v20, 0 }
 0x167   : > { %v540_v60 = vpop.f32.mrf.mxu1 }
 0x168   : > { %v541_v9 = vadd.f32 %v824_v29, %v540_v60 }
 0x16a   : > { %v568_v12 = vmax.f32 %v541_v9, 0.0 }
 0x16f   : > { %v542_v5 = vpop.f32.mrf.mxu1 }
 0x170   : > { %v543_v7 = vadd.f32 %v824_v29, %v542_v5 }
 0x172   : > { %v569_v10 = vmax.f32 %v543_v7, 0.0 }
 0x174   : > { %v581_v14 = vpack.c.bf16 %v569_v10, %v568_v12 }
 0x176   : > { %v609_v17 = vsel %vm592_vm1, %v581_v14, 0 }
 0x17d   : > { %v545_v43 = vpop.f32.mrf.mxu3 }
 0x17e   : > { %v546_v2 = vadd.f32 %v824_v29, %v545_v43 }
 0x180   : > { %v570_v6 = vmax.f32 %v546_v2, 0.0 }
 0x185   : > { %v547_v45 = vpop.f32.mrf.mxu3 }
 0x186   : > { %v548_v0 = vadd.f32 %v824_v29, %v547_v45 }
 0x188   : > { %v571_v3 = vmax.f32 %v548_v0, 0.0 }
 0x18a   : > { %v582_v8 = vpack.c.bf16 %v571_v3, %v570_v6 }
 0x18c   : > { %v612_v11 = vsel %vm592_vm1, %v582_v8, 0  ;;  %v589_v32 = vpop.permute.xlu0 %588 }
 0x18d   : > { %v550_v47 = vpop.f32.mrf.mxu3  ;;  %v591_v33 = vperm.slane %v589_v32, 0 }
 0x18e   : > { %v551_v58 = vadd.f32 %v824_v29, %v550_v47 }
 0x190   : > { %v572_v63 = vmax.f32 %v551_v58, 0.0 }
 0x195   : > { %v552_v48 = vpop.f32.mrf.mxu3 }
 0x196   : > { %v553_v55 = vadd.f32 %v824_v29, %v552_v48 }
 0x198   : > { %v573_v61 = vmax.f32 %v553_v55, 0.0 }
 0x19a   : > { %v583_v1 = vpack.c.bf16 %v573_v61, %v572_v63 }
 0x19c   : > { %v615_v4 = vsel %vm592_vm1, %v583_v1, 0 }
 0x19d   : > { %v555_v50 = vpop.f32.mrf.mxu3 }
 0x19e   : > { %v556_v52 = vadd.f32 %v824_v29, %v555_v50 }
 0x1a0   : > { %v574_v56 = vmax.f32 %v556_v52, 0.0 }
 0x1a5   : > { %v557_v53 = vpop.f32.mrf.mxu3 }
 0x1a6   : > { %v558_v54 = vadd.f32 %v824_v29, %v557_v53  ;;  %v597_v29 = vsel %vm592_vm1, %v1051_v35, 0 }
 0x1a8   : > { %v575_v57 = vmax.f32 %v558_v54, 0.0 }
 0x1aa   : > { %v584_v59 = vpack.c.bf16 %v575_v57, %v574_v56 }
 0x1ac   : > { %v618_v62 = vsel %vm592_vm1, %v584_v59, 0 }
 0x1ad   : > { %620 = vmatpush.bf16.xpose.msra.mxu2 %v618_v62 }
 0x1b5   : > { %621 = vmatpush.bf16.xpose.msra.mxu2 %v615_v4 }
 0x1bd   : > { %622 = vmatpush.bf16.xpose.msra.mxu2 %v612_v11 }
 0x1c5   : > { %623 = vmatpush.bf16.xpose.msra.mxu2 %v609_v17 }
 0x1cd   : > { %624 = vmatpush.bf16.xpose.msra.mxu2 %v606_v23 }
 0x1d5   : > { %625 = vmatpush.bf16.xpose.msra.mxu2 %v603_v28 }
 0x1dd   : > { %626 = vmatpush.bf16.xpose.msra.mxu2 %v600_v30 }
 0x1e5   : > { %627 = vmatpush.bf16.xpose.msra.mxu2 %v597_v29 }
 0x1ec   : > { %761 = vmatmul.msk.bf16.vlgmr.msra.gmra.mxu2 %vm592_vm1, %v576_v31 }
 0x26f   : > { %v629_v34 = vpop.f32.mrf.mxu2 }
 0x270   : > { %v630_v37 = vadd.f32 %v629_v34, %v591_v33 }
 0x272   : > { %v633_v38 = vsub.f32 0.0, %v630_v37 }
 0x274   : > { %v634_v39 = vmul.f32 1.442695, %v633_v38 }
 0x276   : > { %825 = vpow2.f32 %v634_v39 }
 0x277   : > { %v631_v36 = vpop.f32.mrf.mxu2 }
 0x27c   : > { %v826_v40 = vpop.eup %825 }
 0x27d   : > { %v636_v41 = vadd.f32 1.0, %v826_v40 }
 0x27f   : > { %827 = vrcp.f32 %v636_v41 }
 0x285   : > { %v828_v35 = vpop.eup %827 }
 0x286   : > { %638 = vst [vmem:[%s285_s19] sm:$0x1] %v828_v35 }
 0x287   : > { %856 = shalt.err (!%p853_p3)
}
 0x288   : > { %782 = dma.vmem_to_hbm [thread:$0]  (%p975_p5), %s651_s20, 16, %s653_s21, %s640_s23  }
 0x289 PF: > { %p788_p4 = scmp.ge.s32.totalorder %s891_s29, 2  ;;  %s664_s14 = sand.u32 1, %s879_s26  }
 0x28a   : > { %s665_s15 = scalar_lea.sflag [#allocation4], %s664_s14 }
 0x28b   : > { %p785_p7 = pnand %p788_p4, %p979_p6 }
 0x28d   : > { %p786_p8 = pneg %p785_p7 }
 0x28f   : > { %874 = dma.done.wait (%p786_p8), %s665_s15, 16  }
 0x290   : > { %876 = vsyncadd (%p786_p8), %s665_s15, 4294967280  ;;  %p19_p9 = scmp.ge.s32.totalorder %s962_s8, 5   ;;  %s1108_s26 = smov %s883_s27 }
 0x291   : > { %s1109_s27 = smov %s887_s28  ;;  %s1110_s28 = smov %s973_s11 }
 0x292   : > { %s1111_s29 = smov %s962_s8  ;;  %21 = sbr.rel (!%p19_p9) target bundleno = 6 (0x6), region = 83 }
 0x297   :  { %670 = vsyncpa [#allocation4], 1 }
 0x298   :  { %672 = vsyncpa [#allocation4 + $0x1], 1 }

</bundles_post_ra>
